<compile_context>
chip_gen: v5e
topology: v5e:2x2
jax: 0.10.0
libtpu: 0.0.40
codegen_flags: <defaults>
</compile_context>

<pallas_src>
import jax
import jax.numpy as jnp
from jax.experimental import pallas as pl
from jax.experimental.pallas import tpu as pltpu

_LJ = 128                  # joints per lane-dense row (vreg lane width)
_PALLAS_MIN_JOINTS = 65536 # below this, fused XLA beats a kernel launch


# ----------------------------- kernels --------------------------------------

def _exact_reduce3(dsq, rmat_bf16):
    """Exact (f32) x (0/1) reduce via 3 native bf16 MXU passes.

    dsq       : (TR, 3*128) f32, non-negative squared differences.
    rmat_bf16 : (3*128, 128) bf16, exact 0/1 selection matrix.
    Splitting dsq = c1 + c2 + c3 (+ ~2^-24 residual) into bf16 chunks keeps the
    result essentially f32-exact while avoiding Precision.HIGHEST's ~6 passes.
    """
    c1 = dsq.astype(jnp.bfloat16)
    r1 = dsq - c1.astype(jnp.float32)
    c2 = r1.astype(jnp.bfloat16)
    c3 = (r1 - c2.astype(jnp.float32)).astype(jnp.bfloat16)
    acc = jnp.dot(c1, rmat_bf16, preferred_element_type=jnp.float32)
    acc = acc + jnp.dot(c2, rmat_bf16, preferred_element_type=jnp.float32)
    acc = acc + jnp.dot(c3, rmat_bf16, preferred_element_type=jnp.float32)
    return acc


def _mpjpe_kernel(pred_ref, gt_ref, rmat_ref, out_ref):
    """pred/gt: (TR, 3*128) interleaved rows; rmat: (384, 128) bf16; out: (TR, 128)."""
    d = gt_ref[...].astype(jnp.float32) - pred_ref[...].astype(jnp.float32)
    ssq = _exact_reduce3(d * d, rmat_ref[...])
    out_ref[...] = jnp.sqrt(jnp.maximum(ssq, 0.0))


def _mpjpe_masked_kernel(pred_ref, gt_ref, mask_ref, rmat_ref, emat_ref, out_ref):
    """Masked variant. mask: (TR, 128) int8 (0/1); emat: (128, 384) bf16 (0/1)."""
    p = pred_ref[...].astype(jnp.float32)
    g = gt_ref[...].astype(jnp.float32)
    # Expand the per-joint 0/1 mask (TR,128) to the interleaved coordinate
    # layout (TR,384) with a single exact bf16 MXU pass (each emat column has
    # a single 1, both operands are exact 0/1 in bf16).
    m3 = jnp.dot(mask_ref[...].astype(jnp.bfloat16), emat_ref[...],
                 preferred_element_type=jnp.float32)
    # Select (not multiply): masked-out gt is cleanly zeroed even if it holds
    # NaN/Inf, matching `points_gt[~gt_mask] = 0`, and keeps NaNs out of the
    # reduce matmul below (NaN * 0 in the MXU would poison the whole row).
    g = jnp.where(m3 != 0.0, g, 0.0)
    d = g - p
    ssq = _exact_reduce3(d * d, rmat_ref[...])
    out_ref[...] = jnp.sqrt(jnp.maximum(ssq, 0.0))


# ----------------------------- wrapper ---------------------------------------

def _pick_row_block(R, row_block):
    """Row-block: as large as possible (per-step overhead ~0.35us), but keep
    >=2 (ideally 4) grid steps so the "parallel" grid can shard across v7x's
    two TensorCores. Multiple of 32 so f32/bf16/int8 sublane tilings all hold."""
    TR = min(int(row_block), R)
    if R >= 64:
        quarter = (R // 4) // 32 * 32
        half = (R // 2) // 32 * 32
        cap = quarter if quarter >= 256 else max(half, 32)
        TR = min(TR, cap)
    return max(32, (TR // 32) * 32)


def _selection_matrix():
    jj = jnp.arange(_LJ, dtype=jnp.int32)
    kk = jnp.arange(3 * _LJ, dtype=jnp.int32)
    # rmat[3*j + c, j] = 1 ; exact in bf16 (0/1 only).
    return (kk[:, None] // 3 == jj[None, :]).astype(jnp.bfloat16)   # (384, 128)


def _mpjpe_pallas_aligned(pred, gt, mask, row_block):
    """pred/gt: (M, 3) with M % 128 == 0; mask: (M,) int8 (0/1) or None.
    Returns per-joint distance (M,) f32."""
    M = pred.shape[0]
    R = M // _LJ
    pred2 = pred.reshape(R, 3 * _LJ)   # free row-major view: [x0 y0 z0 x1 ...]
    gt2 = gt.reshape(R, 3 * _LJ)

    TR = _pick_row_block(R, row_block)
    grid = (pl.cdiv(R, TR),)

    rmat = _selection_matrix()                         # (384, 128) bf16, resident

    row_spec = pl.BlockSpec((TR, 3 * _LJ), lambda r: (r, 0))
    out_spec = pl.BlockSpec((TR, _LJ), lambda r: (r, 0))
    rmat_spec = pl.BlockSpec((3 * _LJ, _LJ), lambda r: (0, 0))      # resident
    out_shape = jax.ShapeDtypeStruct((R, _LJ), jnp.float32)

    # Explicit VMEM budget so large row blocks also compile on v5e's smaller
    # default scoped-VMEM limit (streams are double-buffered by BlockSpec).
    vmem_limit = int(min(56 * 1024 * 1024, max(32 * 1024 * 1024, TR * 20 * 1024)))
    cparams = pltpu.CompilerParams(dimension_semantics=("parallel",),
                                   vmem_limit_bytes=vmem_limit)

    if mask is None:
        out2d = pl.pallas_call(
            _mpjpe_kernel,
            out_shape=out_shape,
            grid=grid,
            in_specs=[row_spec, row_spec, rmat_spec],
            out_specs=out_spec,
            compiler_params=cparams,
        )(pred2, gt2, rmat)
    else:
        mask2 = mask.reshape(R, _LJ)
        emat = jnp.transpose(rmat)                     # (128, 384) bf16, resident
        mask_spec = pl.BlockSpec((TR, _LJ), lambda r: (r, 0))
        emat_spec = pl.BlockSpec((_LJ, 3 * _LJ), lambda r: (0, 0))
        out2d = pl.pallas_call(
            _mpjpe_masked_kernel,
            out_shape=out_shape,
            grid=grid,
            in_specs=[row_spec, row_spec, mask_spec, rmat_spec, emat_spec],
            out_specs=out_spec,
            compiler_params=cparams,
        )(pred2, gt2, mask2, rmat, emat)

    return out2d.reshape(-1)


def _mpjpe_pallas(y_pr, points_gt, gt_mask=None, *, row_block=1024):
    B, N, C = y_pr.shape
    assert C == 3, "last dim must be the 3 spatial coordinates"
    M = B * N
    pred = y_pr.reshape(M, 3)                          # free view (row-major)
    gt = points_gt.reshape(M, 3)                       # free view
    mask = None
    if gt_mask is not None:
        mask = gt_mask.reshape(M).astype(bool).astype(jnp.int8)   # 1 B/joint

    M_main = (M // _LJ) * _LJ
    if M_main == 0:
        return mpjpe_reference(y_pr, points_gt, gt_mask)

    if M_main == M:
        out = _mpjpe_pallas_aligned(pred, gt, mask, row_block)
    else:
        # No full-array jnp.pad: kernel on the aligned prefix, <128-joint tail
        # in pure JAX, then concatenate.
        out_main = _mpjpe_pallas_aligned(
            pred[:M_main], gt[:M_main],
            None if mask is None else mask[:M_main], row_block)
        tp = pred[M_main:].astype(jnp.float32)
        tg = gt[M_main:].astype(jnp.float32)
        if mask is not None:
            tg = jnp.where(mask[M_main:, None] != 0, tg, 0.0)
        td = tg - tp
        out_tail = jnp.sqrt(jnp.sum(td * td, axis=-1))
        out = jnp.concatenate([out_main, out_tail])

    return out.reshape(B, N)


def mpjpe_reference(y_pr, points_gt, gt_mask=None):
    """Pure-JAX reference mirroring the PyTorch module (reduction=None)."""
    pred = y_pr.astype(jnp.float32)
    gt = points_gt.astype(jnp.float32)
    if gt_mask is not None:
        gt = jnp.where(gt_mask[..., None].astype(bool), gt, 0.0)
    d = gt - pred
    return jnp.sqrt(jnp.sum(d * d, axis=-1))


def mpjpe(y_pr, points_gt, gt_mask=None, *, use_pallas=None, row_block=1024):
    """MPJPE forward (reduction=None). Returns (B, N) per-joint distances (f32)."""
    B, N, C = y_pr.shape
    assert C == 3, "last dim must be the 3 spatial coordinates"
    if use_pallas is None:
        use_pallas = (B * N) >= _PALLAS_MIN_JOINTS
    if not use_pallas:
        return mpjpe_reference(y_pr, points_gt, gt_mask)
    return _mpjpe_pallas(y_pr, points_gt, gt_mask, row_block=row_block)


# ----------------------------- demo / checks ---------------------------------

if __name__ == "__main__":
    key = jax.random.PRNGKey(0)
    k1, k2, k3, k4, k5, k6, k7, k8 = jax.random.split(key, 8)

    # --- tiny shapes matching the module: auto-dispatch -> pure-JAX fallback ---
    B, N = 2, 16
    y_pr = jax.random.normal(k1, (B, N, 3), dtype=jnp.float32)
    points_gt = jax.random.normal(k2, (B, N, 3), dtype=jnp.float32)
    gt_mask = jax.random.bernoulli(k3, p=0.8, shape=(B, N))

    out_small = jax.block_until_ready(mpjpe(y_pr, points_gt, gt_mask))
    ref_small = mpjpe_reference(y_pr, points_gt, gt_mask)
    assert out_small.shape == (B, N)
    assert jnp.allclose(out_small, ref_small, atol=1e-5, rtol=1e-5)

    # --- medium batch, no mask: Pallas kernel, aligned (no slice), 1 grid step -
    Bm, Nm = 256, 16          # M = 4096 (multiple of 128)
    ym = jax.random.normal(k4, (Bm, Nm, 3), dtype=jnp.float32)
    gm = jax.random.normal(k5, (Bm, Nm, 3), dtype=jnp.float32)
    out_med = jax.block_until_ready(mpjpe(ym, gm, use_pallas=True))
    ref_med = mpjpe_reference(ym, gm)
    assert jnp.allclose(out_med, ref_med, atol=1e-5, rtol=1e-5)

    # --- larger batch, masked: multi-step grid, ragged last block, pad-free
    #     ragged tail (pure-JAX), NaN poison in masked-out gt (must be zeroed) --
    Bl, Nl = 1000, 17         # M = 17000 (not a multiple of 128)
    yl = jax.random.normal(k6, (Bl, Nl, 3), dtype=jnp.float32)
    gl = jax.random.normal(k7, (Bl, Nl, 3), dtype=jnp.float32)
    ml = jax.random.bernoulli(k8, p=0.8, shape=(Bl, Nl))
    gl = jnp.where(ml[..., None], gl, jnp.nan)   # poison masked-out gt

    out_big = jax.block_until_ready(mpjpe(yl, gl, ml, use_pallas=True))
    ref_big = mpjpe_reference(yl, gl, ml)
    assert out_big.shape == (Bl, Nl)
    assert bool(jnp.all(jnp.isfinite(out_big)))
    assert jnp.allclose(out_big, ref_big, atol=1e-4, rtol=1e-4)

    # same data, unmasked kernel variant (NaNs cleared first)
    gl_clean = jnp.nan_to_num(gl)
    out_big_nm = jax.block_until_ready(mpjpe(yl, gl_clean, use_pallas=True))
    ref_big_nm = mpjpe_reference(yl, gl_clean)
    assert jnp.allclose(out_big_nm, ref_big_nm, atol=1e-4, rtol=1e-4)

    print("KERNEL_OK")
</pallas_src>

<mosaic_0001>
module attributes {stable_mosaic.version = 11 : i64} {
  func.func @_mpjpe_kernel(%arg0: i32, %arg1: memref<32x384xf32, #tpu.memory_space<vmem>>, %arg2: memref<32x384xf32, #tpu.memory_space<vmem>>, %arg3: memref<384x128xbf16, #tpu.memory_space<vmem>>, %arg4: memref<32x128xf32, #tpu.memory_space<vmem>>) attributes {dimension_semantics = [#tpu.dimension_semantics<parallel>], iteration_bounds = array<i64: 1>, scalar_prefetch = 0 : i64, scratch_operands = 0 : i64, tpu.core_type = #tpu.core_type<tc>, window_params = [{transform_indices = @transform_0, window_bounds = array<i64: 32, 384>}, {transform_indices = @transform_1, window_bounds = array<i64: 32, 384>}, {pipeline_mode = #tpu.pipeline_mode<synchronous>, transform_indices = @transform_2, window_bounds = array<i64: 384, 128>}, {transform_indices = @transform_3, window_bounds = array<i64: 32, 128>}]} {
    %c0 = arith.constant 0 : index
    %c0_0 = arith.constant 0 : index
    %0 = vector.load %arg2[%c0, %c0_0] : memref<32x384xf32, #tpu.memory_space<vmem>>, vector<32x384xf32>
    %c0_1 = arith.constant 0 : index
    %c0_2 = arith.constant 0 : index
    %1 = vector.load %arg1[%c0_1, %c0_2] : memref<32x384xf32, #tpu.memory_space<vmem>>, vector<32x384xf32>
    %2 = arith.subf %0, %1 : vector<32x384xf32>
    %3 = arith.mulf %2, %2 : vector<32x384xf32>
    %c0_3 = arith.constant 0 : index
    %c0_4 = arith.constant 0 : index
    %4 = vector.load %arg3[%c0_3, %c0_4] : memref<384x128xbf16, #tpu.memory_space<vmem>>, vector<384x128xbf16>
    %5 = arith.truncf %3 : vector<32x384xf32> to vector<32x384xbf16>
    %6 = arith.extf %5 : vector<32x384xbf16> to vector<32x384xf32>
    %7 = arith.subf %3, %6 : vector<32x384xf32>
    %8 = arith.truncf %7 : vector<32x384xf32> to vector<32x384xbf16>
    %9 = arith.extf %8 : vector<32x384xbf16> to vector<32x384xf32>
    %10 = arith.subf %7, %9 : vector<32x384xf32>
    %11 = arith.truncf %10 : vector<32x384xf32> to vector<32x384xbf16>
    %cst = arith.constant dense<0.000000e+00> : vector<32x128xf32>
    %12 = tpu.matmul %5, %4, %cst {dimension_numbers = #tpu.dot_dimension_numbers<[1], [0], [0], [1], [0, 0, 1, 1], [], []>} : vector<32x384xbf16>, vector<384x128xbf16>, vector<32x128xf32> -> vector<32x128xf32>
    %cst_5 = arith.constant dense<0.000000e+00> : vector<32x128xf32>
    %13 = tpu.matmul %8, %4, %cst_5 {dimension_numbers = #tpu.dot_dimension_numbers<[1], [0], [0], [1], [0, 0, 1, 1], [], []>} : vector<32x384xbf16>, vector<384x128xbf16>, vector<32x128xf32> -> vector<32x128xf32>
    %14 = arith.addf %12, %13 : vector<32x128xf32>
    %cst_6 = arith.constant dense<0.000000e+00> : vector<32x128xf32>
    %15 = tpu.matmul %11, %4, %cst_6 {dimension_numbers = #tpu.dot_dimension_numbers<[1], [0], [0], [1], [0, 0, 1, 1], [], []>} : vector<32x384xbf16>, vector<384x128xbf16>, vector<32x128xf32> -> vector<32x128xf32>
    %16 = arith.addf %14, %15 : vector<32x128xf32>
    %cst_7 = arith.constant 0.000000e+00 : f32
    %17 = vector.broadcast %cst_7 : f32 to vector<32x128xf32>
    %18 = arith.maximumf %16, %17 : vector<32x128xf32>
    %19 = math.sqrt %18 : vector<32x128xf32>
    %c0_8 = arith.constant 0 : index
    %c0_9 = arith.constant 0 : index
    %20 = vector.load %arg4[%c0_8, %c0_9] : memref<32x128xf32, #tpu.memory_space<vmem>>, vector<32x128xf32>
    tpu.vector_store %arg4[%c0_8, %c0_9], %19 {strides = array<i32>} : memref<32x128xf32, #tpu.memory_space<vmem>>, vector<32x128xf32>,
    return
  }
  func.func @transform_0(%arg0: i32) -> (i32, i32) {
    %c0_i32 = arith.constant 0 : i32
    %c0_i32_0 = arith.constant 0 : i32
    return %arg0, %c0_i32 : i32, i32
  }
  func.func @transform_1(%arg0: i32) -> (i32, i32) {
    %c0_i32 = arith.constant 0 : i32
    %c0_i32_0 = arith.constant 0 : i32
    return %arg0, %c0_i32 : i32, i32
  }
  func.func @transform_2(%arg0: i32) -> (i32, i32) {
    %c0_i32 = arith.constant 0 : i32
    %c0_i32_0 = arith.constant 0 : i32
    %c0_i32_1 = arith.constant 0 : i32
    return %c0_i32, %c0_i32_0 : i32, i32
  }
  func.func @transform_3(%arg0: i32) -> (i32, i32) {
    %c0_i32 = arith.constant 0 : i32
    %c0_i32_0 = arith.constant 0 : i32
    return %arg0, %c0_i32 : i32, i32
  }
}

</mosaic_0001>

<bundles_post_ra>
// kernel: tpu_custom_call.1
= control target key start
LH: loop header
LB: loop body
LE: loop exit
PB: predicated region body
PF: predicated region fallthrough
CT: control target
= control target key end

     0   :  { %8 = vsyncpa [#allocation3], 0  ;;  %s1237_s0 = inlined_call_operand.hbm [shape: f32[32,384], index: 0, kind: input, shape index: {}]   ;;  %s1238_s1 = inlined_call_operand.hbm [shape: f32[32,384], index: 1, kind: input, shape index: {}]   ;;  %s1239_s2 = inlined_call_operand.hbm [shape: bf16[384,128], index: 2, kind: input, shape index: {}]   ;;  %s1240_s3 = inlined_call_operand.hbm [shape: f32[32,128], index: 3, kind: output, shape index: {}]  }
   0x1   :  { %9 = vsyncpa [#allocation6], 0 }
   0x2   :  { %10 = vsyncpa [#allocation4], 0  ;;  %s28_s14 = sshll.u32 %s1238_s1, 4  ;;  %s935_s15 = smov [#allocation5]   ;;  %s29_s14 = int_to_ptr.hbm [resolvable:$true] %s28_s14 }
   0x3   :  { %s30_s16 = sshll.u32 %s935_s15, 4  ;;  %s15_s19 = sshll.u32 %s1237_s0, 4  ;;  %s31_s16 = int_to_ptr.vmem [resolvable:$true] %s30_s16  ;;  %s16_s19 = int_to_ptr.hbm [resolvable:$true] %s15_s19 }
   0x4   :  { %s936_s20 = smov 384   ;;  %s937_s21 = smov 24  }
   0x5   :  { %36 = dma.hbm_to_vmem [thread:$0]  %s29_s14, 1536, %s31_s16, [#allocation6], %s936_s20, %s936_s20, %s937_s21  }
   0x6   :  { %s938_s22 = smov [#allocation2]   ;;  %s41_s26 = sshll.u32 %s1239_s2, 4  ;;  %s42_s26 = int_to_ptr.hbm [resolvable:$true] %s41_s26 }
   0x7   :  { %s17_s23 = sshll.u32 %s938_s22, 4  ;;  %s939_s1 = smov [#allocation7]   ;;  %s18_s23 = int_to_ptr.vmem [resolvable:$true] %s17_s23 }
   0x8   :  { %23 = dma.hbm_to_vmem [thread:$0]  %s16_s19, 1536, %s18_s23, [#allocation3], %s936_s20, %s936_s20, %s937_s21  }
   0x9   :  { %s43_s27 = sshll.u32 %s939_s1, 4  ;;  %s940_s28 = smov 64   ;;  %s44_s27 = int_to_ptr.vmem [resolvable:$true] %s43_s27 }
   0xa   :  { %s941_s29 = smov 4  }
   0xb   :  { %49 = dma.hbm_to_vmem [thread:$0]  %s42_s26, 3072, %s44_s27, [#allocation6], %s940_s28, %s940_s28, %s941_s29  }
   0xc   :  { %929 = dma.done.wait [#allocation3], 1536  }
   0xd   :  { %930 = vsyncadd [#allocation3], 4294965760 }
   0xe   :  { %931 = dma.done.wait [#allocation6], 4608  }
   0xf   :  { %932 = vsyncadd [#allocation6], 4294962688  ;;  %v974_v0 = vld [vmem:[#allocation7 + $0x38] sm:$0xff]  ;;  %v982_v3 = vld [vmem:[#allocation7 + $0x30] sm:$0xff]  ;;  %s942_s0 = smov [#allocation8]   ;;  %s673_s5 = sshll.u32 %s1240_s3, 4  ;;  %s674_s5 = int_to_ptr.hbm [resolvable:$true] %s673_s5 }
  0x10   :  { %v976_v1 = vld [vmem:[#allocation7 + $0x78] sm:$0xff]  ;;  %404 = vmatpush.bf16.msra.mxu0 %v974_v0  ;;  %v984_v4 = vld [vmem:[#allocation7 + $0x70] sm:$0xff]  ;;  %493 = vmatpush.bf16.msra.mxu3 %v974_v0  ;;  %v992_v6 = vld [vmem:[#allocation7 + $0x28] sm:$0xff]  ;;  %s671_s2 = sshll.u32 %s942_s0, 4  ;;  %s943_s6 = smov 128   ;;  %s672_s2 = int_to_ptr.vmem [resolvable:$true] %s671_s2 }
  0x11   :  { %v978_v2 = vld [vmem:[#allocation7 + $0xb8] sm:$0xff]  ;;  %423 = vmatpush.bf16.msra.mxu1 %v976_v1  ;;  %v988_v5 = vld [vmem:[#allocation7 + $0xb0] sm:$0xff]  ;;  %v994_v7 = vld [vmem:[#allocation7 + $0x68] sm:$0xff]  ;;  %s944_s7 = smov 8  }
  0x12   :  { %442 = vmatpush.bf16.msra.mxu2 %v978_v2  ;;  %v998_v8 = vld [vmem:[#allocation7 + $0xa8] sm:$0xff]  ;;  %v1000_v9 = vld [vmem:[#allocation7 + $0x20] sm:$0xff]  ;;  %v65_v13 = vld [vmem:[#allocation5 + $0x18] sm:$0xff] }
  0x13   :  { %v1002_v10 = vld [vmem:[#allocation7 + $0x60] sm:$0xff]  ;;  %v63_v12 = vld [vmem:[#allocation5 + $0x8] sm:$0xff]  ;;  %v77_v18 = vld [vmem:[#allocation2 + $0x18] sm:$0xff] }
  0x14   :  { %405 = vmatpush.bf16.msra.mxu0 %v982_v3  ;;  %494 = vmatpush.bf16.msra.mxu3 %v982_v3  ;;  %v62_v11 = vld [vmem:[#allocation5] sm:$0xff]  ;;  %v75_v17 = vld [vmem:[#allocation2 + $0x8] sm:$0xff]  ;;  %v64_v22 = vld [vmem:[#allocation5 + $0x10] sm:$0xff]  ;;  %v89_v23 = vsub.f32 %v65_v13, %v77_v18 }
  0x15   :  { %424 = vmatpush.bf16.msra.mxu1 %v984_v4  ;;  %v1004_v14 = vld [vmem:[#allocation7 + $0xa0] sm:$0xff]  ;;  %v87_v21 = vsub.f32 %v63_v12, %v75_v17  ;;  %v67_v25 = vld [vmem:[#allocation5 + $0x28] sm:$0xff]  ;;  %v76_v26 = vld [vmem:[#allocation2 + $0x10] sm:$0xff] }
  0x16   :  { %443 = vmatpush.bf16.msra.mxu2 %v988_v5  ;;  %v66_v15 = vld [vmem:[#allocation5 + $0x20] sm:$0xff]  ;;  %v79_v27 = vld [vmem:[#allocation2 + $0x28] sm:$0xff]  ;;  %v88_v30 = vsub.f32 %v64_v22, %v76_v26  ;;  %v1010_v32 = vld [vmem:[#allocation7 + $0x18] sm:$0xff]  ;;  %v101_v34 = vmul.f32 %v89_v23, %v89_v23 }
  0x17   :  { %v74_v16 = vld [vmem:[#allocation2] sm:$0xff]  ;;  %v99_v29 = vmul.f32 %v87_v21, %v87_v21  ;;  %v91_v31 = vsub.f32 %v67_v25, %v79_v27  ;;  %v1012_v33 = vld [vmem:[#allocation7 + $0x58] sm:$0xff]  ;;  %v68_v36 = vld [vmem:[#allocation5 + $0x30] sm:$0xff] }
  0x18   :  { %406 = vmatpush.bf16.msra.mxu0 %v992_v6  ;;  %v78_v19 = vld [vmem:[#allocation2 + $0x20] sm:$0xff]  ;;  %v86_v20 = vsub.f32 %v62_v11, %v74_v16  ;;  %495 = vmatpush.bf16.msra.mxu3 %v992_v6  ;;  %v100_v38 = vmul.f32 %v88_v30, %v88_v30  ;;  %v69_v40 = vld [vmem:[#allocation5 + $0x38] sm:$0xff]  ;;  %v80_v41 = vld [vmem:[#allocation2 + $0x30] sm:$0xff] }
  0x19   :  { %425 = vmatpush.bf16.msra.mxu1 %v994_v7  ;;  %v90_v24 = vsub.f32 %v66_v15, %v78_v19  ;;  %v103_v39 = vmul.f32 %v91_v31, %v91_v31  ;;  %v81_v42 = vld [vmem:[#allocation2 + $0x38] sm:$0xff]  ;;  %v1030_v49 = vld [vmem:[#allocation7 + $0x10] sm:$0xff]  ;;  %v71_v52 = vld [vmem:[#allocation5 + $0x48] sm:$0xff]  ;;  %v92_v54 = vsub.f32 %v68_v36, %v80_v41 }
  0x1a   :  { %444 = vmatpush.bf16.msra.mxu2 %v998_v8  ;;  %v98_v28 = vmul.f32 %v86_v20, %v86_v20  ;;  %v1020_v43 = vld [vmem:[#allocation7 + $0x98] sm:$0xff]  ;;  %v1026_v47 = vpack.c.bf16 %v100_v38, %v100_v38  ;;  %v83_v53 = vld [vmem:[#allocation2 + $0x48] sm:$0xff]  ;;  %v93_v55 = vsub.f32 %v69_v40, %v81_v42  ;;  %v1036_v56 = vld [vmem:[#allocation7 + $0x50] sm:$0xff] }
  0x1b   :  { %v102_v35 = vmul.f32 %v90_v24, %v90_v24  ;;  %v1028_v48 = vpack.c.bf16 %v103_v39, %v103_v39  ;;  %v72_v61 = vld [vmem:[#allocation5 + $0x50] sm:$0xff]  ;;  %v95_v17 = vsub.f32 %v71_v52, %v83_v53  ;;  %v1060_v18 = vld [vmem:[#allocation7 + $0x8] sm:$0xff]  ;;  %v104_v21 = vmul.f32 %v92_v54, %v92_v54  ;;  %v70_v27 = vld [vmem:[#allocation5 + $0x40] sm:$0xff] }
  0x1c   :  { %407 = vmatpush.bf16.msra.mxu0 %v1000_v9  ;;  %v1016_v37 = vpack.c.bf16 %v99_v29, %v98_v28  ;;  %496 = vmatpush.bf16.msra.mxu3 %v1000_v9  ;;  %v168_v59 = vunpack.c.l.bf16 %v1026_v47  ;;  %v84_v62 = vld [vmem:[#allocation2 + $0x50] sm:$0xff]  ;;  %v105_v22 = vmul.f32 %v93_v55, %v93_v55  ;;  %v1068_v23 = vld [vmem:[#allocation7 + $0x48] sm:$0xff]  ;;  %v85_v36 = vld [vmem:[#allocation2 + $0x58] sm:$0xff] }
  0x1d   :  { %426 = vmatpush.bf16.msra.mxu1 %v1002_v10  ;;  %v1022_v44 = vpack.c.bf16 %v102_v35, %v101_v34  ;;  %v171_v60 = vunpack.c.l.bf16 %v1028_v48  ;;  %v1046_v63 = vld [vmem:[#allocation7 + $0x90] sm:$0xff]  ;;  %v96_v20 = vsub.f32 %v72_v61, %v84_v62  ;;  %v1070_v24 = vld [vmem:[#allocation7 + $0x88] sm:$0xff]  ;;  %v107_v30 = vmul.f32 %v95_v17, %v95_v17  ;;  %v1102_v55 = vld [vmem:[#allocation7 + $0x80] sm:$0xff] }
  0x1e   :  { %445 = vmatpush.bf16.msra.mxu2 %v1004_v14  ;;  %v166_v45 = vunpack.c.l.bf16 %v1016_v37  ;;  %v167_v46 = vunpack.c.h.bf16 %v1016_v37  ;;  %v1056_v15 = vsub.f32 %v100_v38, %v168_v59  ;;  %v1088_v42 = vpack.c.bf16 %v105_v22, %v104_v21 }
  0x1f   :  { %v169_v50 = vunpack.c.l.bf16 %v1022_v44  ;;  %v170_v51 = vunpack.c.h.bf16 %v1022_v44  ;;  %v1058_v16 = vsub.f32 %v103_v39, %v171_v60  ;;  %v108_v31 = vmul.f32 %v96_v20, %v96_v20 }
  0x20   :  { %408 = vmatpush.bf16.msra.mxu0 %v1010_v32  ;;  %v1038_v57 = vsub.f32 %v98_v28, %v166_v45  ;;  %v1040_v58 = vsub.f32 %v99_v29, %v167_v46  ;;  %497 = vmatpush.bf16.msra.mxu3 %v1010_v32  ;;  %1243 = vst [vmem:[#allocation12_spill] sm:$0xff] %v1056_v15  ;;  %v469_v28 = vunpack.c.l.b16 %v1016_v37  ;;  %v472_v29 = vunpack.c.l.b16 %v1022_v44  ;;  %v1094_v46 = vld [vmem:[#allocation7] sm:$0xff] }
  0x21   :  { %427 = vmatpush.bf16.msra.mxu1 %v1012_v33  ;;  %v1048_v11 = vsub.f32 %v101_v34, %v169_v50  ;;  %v1050_v12 = vsub.f32 %v102_v35, %v170_v51  ;;  %1244 = vst [vmem:[#allocation13_spill] sm:$0xff] %v1058_v16  ;;  %v1074_v25 = vpack.c.bf16 %v1056_v15, %v1056_v15  ;;  %v73_v34 = vld [vmem:[#allocation5 + $0x58] sm:$0xff]  ;;  %v82_v35 = vld [vmem:[#allocation2 + $0x40] sm:$0xff]  ;;  %v172_v61 = vunpack.c.l.bf16 %v1088_v42 }
  0x22   :  { %446 = vmatpush.bf16.msra.mxu2 %v1020_v43  ;;  %v1054_v13 = vpack.c.bf16 %v1040_v58, %v1038_v57  ;;  %v1078_v26 = vpack.c.bf16 %v1058_v16, %v1058_v16  ;;  %v1090_v45 = vpack.c.bf16 %v108_v31, %v107_v30  ;;  %v1096_v50 = vld [vmem:[#allocation7 + $0x40] sm:$0xff]  ;;  %v94_v53 = vsub.f32 %v70_v27, %v82_v35 }
  0x23   :  { %v1064_v19 = vpack.c.bf16 %v1050_v12, %v1048_v11  ;;  %v238_v51 = vunpack.c.l.b16 %v1074_v25  ;;  %v97_v54 = vsub.f32 %v73_v34, %v85_v36  ;;  %v481_v59 = vpack.c.b16 %v472_v29, %v469_v28 }
  0x24   :  { %409 = vmatpush.bf16.msra.mxu0 %v1030_v49  ;;  %498 = vmatpush.bf16.msra.mxu3 %v1030_v49  ;;  %v236_v38 = vunpack.c.l.b16 %v1054_v13  ;;  %v237_v40 = vunpack.c.h.b16 %v1054_v13  ;;  %v241_v52 = vunpack.c.l.b16 %v1078_v26  ;;  %v106_v62 = vmul.f32 %v94_v53, %v94_v53 }
  0x25   :  { %428 = vmatpush.bf16.msra.mxu1 %v1036_v56  ;;  %v239_v39 = vunpack.c.l.b16 %v1064_v19  ;;  %v240_v41 = vunpack.c.h.b16 %v1064_v19  ;;  %v109_v17 = vmul.f32 %v97_v54, %v97_v54  ;;  %v173_v16 = vunpack.c.h.bf16 %v1088_v42 }
  0x26   :  { %447 = vmatpush.bf16.msra.mxu2 %v1046_v63  ;;  %v175_v15 = vunpack.c.l.bf16 %v1090_v45  ;;  %v176_v27 = vunpack.c.h.bf16 %v1090_v45  ;;  %v250_v34 = vpack.c.b16 %v241_v52, %v238_v51  ;;  %v1110_v35 = vpack.c.bf16 %v106_v62, %v106_v62 }
  0x27   :  { %v248_v60 = vpack.c.b16 %v239_v39, %v236_v38  ;;  %v249_v20 = vpack.c.b16 %v240_v41, %v237_v40  ;;  %v1112_v28 = vpack.c.bf16 %v109_v17, %v109_v17  ;;  %v1118_v29 = vsub.f32 %v104_v21, %v172_v61 }
  0x28   :  { %410 = vmatpush.bf16.msra.mxu0 %v1060_v18  ;;  %499 = vmatpush.bf16.msra.mxu3 %v1060_v18  ;;  %v174_v36 = vunpack.c.l.bf16 %v1110_v35  ;;  %v1122_v39 = vsub.f32 %v105_v22, %v173_v16  ;;  %v1124_v40 = vsub.f32 %v107_v30, %v175_v15  ;;  %v1126_v41 = vsub.f32 %v108_v31, %v176_v27  ;;  %v1245_v27 = vld [vmem:[#allocation12_spill] sm:$0xff] }
  0x29   :  { %429 = vmatpush.bf16.msra.mxu1 %v1068_v23  ;;  %v177_v38 = vunpack.c.l.bf16 %v1112_v28 }
  0x2a   :  { %448 = vmatpush.bf16.msra.mxu2 %v1070_v24  ;;  %v1128_v51 = vsub.f32 %v106_v62, %v174_v36  ;;  %v1138_v15 = vpack.c.bf16 %v1122_v39, %v1118_v29  ;;  %v1142_v16 = vpack.c.bf16 %v1126_v41, %v1124_v40  ;;  %v477_v36 = vunpack.c.l.b16 %v1110_v35 }
  0x2b   :  { %v1130_v52 = vsub.f32 %v109_v17, %v177_v38  ;;  %v200_v17 = vunpack.c.l.bf16 %v1074_v25 }
  0x2c   :  { %411 = vmatpush.bf16.msra.mxu0 %v1094_v46  ;;  %500 = vmatpush.bf16.msra.mxu3 %v1094_v46  ;;  %v1146_v21 = vpack.c.bf16 %v1128_v51, %v1128_v51  ;;  %v245_v22 = vunpack.c.l.b16 %v1142_v16  ;;  %v243_v30 = vunpack.c.h.b16 %v1138_v15  ;;  %v246_v31 = vunpack.c.h.b16 %v1142_v16 }
  0x2d   :  { %430 = vmatpush.bf16.msra.mxu1 %v1096_v50 }
  0x2e   :  { %449 = vmatpush.bf16.msra.mxu2 %v1102_v55  ;;  %v244_v53 = vunpack.c.l.b16 %v1146_v21  ;;  %v206_v35 = vunpack.c.l.bf16 %v1146_v21 }
  0x2f   :  { %412 = vmatmul.bf16.vlgmr.msra.gmra.mxu0 %v248_v60  ;;  %501 = vmatmul.bf16.vlgmr.msra.gmra.mxu3 %v481_v59  ;;  %v252_v60 = vpack.c.b16 %v246_v31, %v243_v30 }
  0x30   :  { %512 = vmatpush.bf16.msrb.mxu0 %v976_v1  ;;  %431 = vmatmul.bf16.vlgmr.msra.gmra.mxu1 %v249_v20  ;;  %v203_v20 = vunpack.c.l.bf16 %v1078_v26 }
  0x31   :  { %531 = vmatpush.bf16.msrb.mxu1 %v978_v2  ;;  %450 = vmatmul.bf16.vlgmr.msra.gmra.mxu2 %v250_v34  ;;  %v1246_v34 = vld [vmem:[#allocation13_spill] sm:$0xff] }
  0x32   :  { %550 = vmatpush.bf16.msrb.mxu2 %v974_v0  ;;  %569 = vmatpush.bf16.msrb.mxu3 %v976_v1  ;;  %v1150_v0 = vpack.c.bf16 %v1130_v52, %v1130_v52  ;;  %v242_v1 = vunpack.c.l.b16 %v1138_v15 }
  0x34   :  { %513 = vmatpush.bf16.msrb.mxu0 %v984_v4  ;;  %v247_v54 = vunpack.c.l.b16 %v1150_v0  ;;  %v251_v59 = vpack.c.b16 %v245_v22, %v242_v1 }
  0x35   :  { %532 = vmatpush.bf16.msrb.mxu1 %v988_v5 }
  0x36   :  { %551 = vmatpush.bf16.msrb.mxu2 %v982_v3  ;;  %570 = vmatpush.bf16.msrb.mxu3 %v984_v4  ;;  %v475_v3 = vunpack.c.l.b16 %v1088_v42  ;;  %v478_v4 = vunpack.c.l.b16 %v1090_v45  ;;  %v253_v61 = vpack.c.b16 %v247_v54, %v244_v53 }
  0x38   :  { %514 = vmatpush.bf16.msrb.mxu0 %v994_v7  ;;  %v484_v62 = vpack.c.b16 %v478_v4, %v475_v3 }
  0x39   :  { %533 = vmatpush.bf16.msrb.mxu1 %v998_v8 }
  0x3a   :  { %552 = vmatpush.bf16.msrb.mxu2 %v992_v6  ;;  %571 = vmatpush.bf16.msrb.mxu3 %v994_v7  ;;  %v198_v6 = vunpack.c.l.bf16 %v1054_v13  ;;  %v201_v7 = vunpack.c.l.bf16 %v1064_v19 }
  0x3c   :  { %515 = vmatpush.bf16.msrb.mxu0 %v1002_v10  ;;  %v210_v25 = vsub.f32 %v1038_v57, %v198_v6  ;;  %v213_v26 = vsub.f32 %v1048_v11, %v201_v7 }
  0x3d   :  { %534 = vmatpush.bf16.msrb.mxu1 %v1004_v14 }
  0x3e   :  { %553 = vmatpush.bf16.msrb.mxu2 %v1000_v9  ;;  %572 = vmatpush.bf16.msrb.mxu3 %v1002_v10  ;;  %v199_v9 = vunpack.c.h.bf16 %v1054_v13  ;;  %v202_v10 = vunpack.c.h.bf16 %v1064_v19  ;;  %v471_v13 = vunpack.c.l.b16 %v1026_v47  ;;  %v474_v19 = vunpack.c.l.b16 %v1028_v48 }
  0x3f   :  { %417 = vmatmul.bf16.gmra.mxu0 %v251_v59  ;;  %506 = vmatmul.bf16.gmra.mxu3 %v484_v62 }
  0x40   :  { %516 = vmatpush.bf16.msrb.mxu0 %v1012_v33  ;;  %436 = vmatmul.bf16.gmra.mxu1 %v252_v60  ;;  %v483_v48 = vpack.c.b16 %v474_v19, %v471_v13 }
  0x41   :  { %535 = vmatpush.bf16.msrb.mxu1 %v1020_v43  ;;  %455 = vmatmul.bf16.gmra.mxu2 %v253_v61 }
  0x42   :  { %554 = vmatpush.bf16.msrb.mxu2 %v1010_v32  ;;  %573 = vmatpush.bf16.msrb.mxu3 %v1012_v33  ;;  %v470_v32 = vunpack.c.h.b16 %v1016_v37  ;;  %v473_v33 = vunpack.c.h.b16 %v1022_v44  ;;  %v212_v37 = vsub.f32 %v1245_v27, %v200_v17  ;;  %v215_v44 = vsub.f32 %v1246_v34, %v203_v20 }
  0x44   :  { %517 = vmatpush.bf16.msrb.mxu0 %v1036_v56  ;;  %v482_v47 = vpack.c.b16 %v473_v33, %v470_v32  ;;  %v224_v57 = vpack.c.bf16 %v215_v44, %v212_v37 }
  0x45   :  { %536 = vmatpush.bf16.msrb.mxu1 %v1046_v63 }
  0x46   :  { %555 = vmatpush.bf16.msrb.mxu2 %v1030_v49  ;;  %574 = vmatpush.bf16.msrb.mxu3 %v1036_v56  ;;  %v211_v49 = vsub.f32 %v1040_v58, %v199_v9  ;;  %v214_v56 = vsub.f32 %v1050_v12, %v202_v10  ;;  %v222_v58 = vpack.c.bf16 %v213_v26, %v210_v25  ;;  %v204_v12 = vunpack.c.l.bf16 %v1138_v15 }
  0x48   :  { %518 = vmatpush.bf16.msrb.mxu0 %v1068_v23  ;;  %v223_v11 = vpack.c.bf16 %v214_v56, %v211_v49  ;;  %v216_v38 = vsub.f32 %v1118_v29, %v204_v12 }
  0x49   :  { %537 = vmatpush.bf16.msrb.mxu1 %v1070_v24 }
  0x4a   :  { %556 = vmatpush.bf16.msrb.mxu2 %v1060_v18  ;;  %575 = vmatpush.bf16.msrb.mxu3 %v1068_v23  ;;  %v207_v18 = vunpack.c.l.bf16 %v1142_v16  ;;  %v208_v23 = vunpack.c.h.bf16 %v1142_v16 }
  0x4c   :  { %519 = vmatpush.bf16.msrb.mxu0 %v1096_v50  ;;  %v219_v1 = vsub.f32 %v1124_v40, %v207_v18  ;;  %v220_v16 = vsub.f32 %v1126_v41, %v208_v23 }
  0x4d   :  { %538 = vmatpush.bf16.msrb.mxu1 %v1102_v55 }
  0x4e   :  { %557 = vmatpush.bf16.msrb.mxu2 %v1094_v46  ;;  %576 = vmatpush.bf16.msrb.mxu3 %v1096_v50  ;;  %v476_v46 = vunpack.c.h.b16 %v1088_v42  ;;  %v479_v50 = vunpack.c.h.b16 %v1090_v45  ;;  %v225_v22 = vpack.c.bf16 %v219_v1, %v216_v38 }
  0x4f   :  { %520 = vmatmul.bf16.vlgmr.msrb.gmra.mxu0 %v482_v47 }
  0x50   :  { %588 = vmatpush.bf16.msra.mxu0 %v978_v2  ;;  %539 = vmatmul.bf16.vlgmr.msrb.gmra.mxu1 %v483_v48 }
  0x51   :  { %807 = vmatpush.bf16.msra.mxu1 %v978_v2  ;;  %558 = vmatmul.bf16.vlgmr.msrb.gmra.mxu2 %v222_v58  ;;  %v205_v2 = vunpack.c.h.bf16 %v1138_v15 }
  0x52   :  { %577 = vmatmul.bf16.vlgmr.msrb.gmra.mxu3 %v223_v11 }
  0x53   :  { %v217_v15 = vsub.f32 %v1122_v39, %v205_v2 }
  0x54   :  { %589 = vmatpush.bf16.msra.mxu0 %v988_v5 }
  0x55   :  { %808 = vmatpush.bf16.msra.mxu1 %v988_v5  ;;  %v480_v5 = vunpack.c.l.b16 %v1112_v28  ;;  %v226_v45 = vpack.c.bf16 %v220_v16, %v217_v15  ;;  %v218_v28 = vsub.f32 %v1128_v51, %v206_v35 }
  0x57   :  { %v486_v42 = vpack.c.b16 %v480_v5, %v477_v36 }
  0x58   :  { %590 = vmatpush.bf16.msra.mxu0 %v998_v8 }
  0x59   :  { %809 = vmatpush.bf16.msra.mxu1 %v998_v8  ;;  %v485_v8 = vpack.c.b16 %v479_v50, %v476_v46 }
  0x5c   :  { %591 = vmatpush.bf16.msra.mxu0 %v1004_v14 }
  0x5d   :  { %810 = vmatpush.bf16.msra.mxu1 %v1004_v14  ;;  %v209_v14 = vunpack.c.l.bf16 %v1150_v0 }
  0x5f   :  { %525 = vmatmul.bf16.gmra.mxu0 %v485_v8 }
  0x60   :  { %592 = vmatpush.bf16.msra.mxu0 %v1020_v43  ;;  %544 = vmatmul.bf16.gmra.mxu1 %v486_v42 }
  0x61   :  { %811 = vmatpush.bf16.msra.mxu1 %v1020_v43  ;;  %563 = vmatmul.bf16.gmra.mxu2 %v225_v22  ;;  %v221_v43 = vsub.f32 %v1130_v52, %v209_v14 }
  0x62   :  { %582 = vmatmul.bf16.gmra.mxu3 %v226_v45 }
  0x63   :  { %v227_v29 = vpack.c.bf16 %v221_v43, %v218_v28 }
  0x64   :  { %593 = vmatpush.bf16.msra.mxu0 %v1046_v63 }
  0x65   :  { %812 = vmatpush.bf16.msra.mxu1 %v1046_v63 }
  0x68   :  { %594 = vmatpush.bf16.msra.mxu0 %v1070_v24 }
  0x69   :  { %813 = vmatpush.bf16.msra.mxu1 %v1070_v24 }
  0x6c   :  { %595 = vmatpush.bf16.msra.mxu0 %v1102_v55 }
  0x6d   :  { %814 = vmatpush.bf16.msra.mxu1 %v1102_v55 }
  0x6f   :  { %596 = vmatmul.bf16.vlgmr.msra.gmra.mxu0 %v224_v57 }
  0x70   :  { %601 = vmatmul.bf16.vlgmr.msra.gmra.mxu1 %v227_v29 }
  0xac   :  { %v413_v63 = vpop.f32.mrf.mxu0 }
  0xad   :  { %v432_v39 = vpop.f32.mrf.mxu1 }
  0xae   :  { %v433_v32 = vadd.f32 %v432_v39, %v413_v63 }
  0xb2   :  { %v502_v41 = vpop.f32.mrf.mxu3 }
  0xb4   :  { %v451_v40 = vpop.f32.mrf.mxu2  ;;  %v415_v21 = vpop.f32.mrf.mxu0 }
  0xb5   :  { %v434_v0 = vpop.f32.mrf.mxu1  ;;  %v452_v13 = vadd.f32 %v451_v40, %v433_v32 }
  0xb6   :  { %v435_v34 = vadd.f32 %v434_v0, %v415_v21 }
  0xb7   :  { %v503_v27 = vadd.f32 %v502_v41, %v452_v13 }
  0xba   :  { %v504_v31 = vpop.f32.mrf.mxu3 }
  0xbc   :  { %v453_v30 = vpop.f32.mrf.mxu2  ;;  %v418_v24 = vpop.f32.mrf.mxu0 }
  0xbd   :  { %v437_v53 = vpop.f32.mrf.mxu1  ;;  %v454_v58 = vadd.f32 %v453_v30, %v435_v34 }
  0xbe   :  { %v438_v33 = vadd.f32 %v437_v53, %v418_v24 }
  0xbf   :  { %v505_v5 = vadd.f32 %v504_v31, %v454_v58 }
  0xc2   :  { %v507_v54 = vpop.f32.mrf.mxu3 }
  0xc4   :  { %v456_v51 = vpop.f32.mrf.mxu2  ;;  %v420_v52 = vpop.f32.mrf.mxu0 }
  0xc5   :  { %v439_v3 = vpop.f32.mrf.mxu1  ;;  %v457_v19 = vadd.f32 %v456_v51, %v438_v33 }
  0xc6   :  { %v440_v44 = vadd.f32 %v439_v3, %v420_v52 }
  0xc7   :  { %v508_v37 = vadd.f32 %v507_v54, %v457_v19 }
  0xca   :  { %v509_v59 = vpop.f32.mrf.mxu3 }
  0xcc   :  { %v458_v4 = vpop.f32.mrf.mxu2  ;;  %v521_v55 = vpop.f32.mrf.mxu0 }
  0xcd   :  { %v540_v60 = vpop.f32.mrf.mxu1  ;;  %v522_v47 = vadd.f32 %v521_v55, %v503_v27  ;;  %v459_v11 = vadd.f32 %v458_v4, %v440_v44 }
  0xcf   :  { %v541_v23 = vadd.f32 %v540_v60, %v522_v47  ;;  %v510_v38 = vadd.f32 %v509_v59, %v459_v11 }
  0xd4   :  { %v559_v61 = vpop.f32.mrf.mxu2  ;;  %v523_v6 = vpop.f32.mrf.mxu0 }
  0xd5   :  { %v578_v62 = vpop.f32.mrf.mxu3  ;;  %v542_v7 = vpop.f32.mrf.mxu1  ;;  %v524_v42 = vadd.f32 %v523_v6, %v505_v5 }
  0xd6   :  { %v579_v12 = vadd.f32 %v578_v62, %v559_v61 }
  0xd7   :  { %v543_v63 = vadd.f32 %v542_v7, %v524_v42 }
  0xdc   :  { %v561_v9 = vpop.f32.mrf.mxu2  ;;  %v526_v17 = vpop.f32.mrf.mxu0 }
  0xdd   :  { %v580_v10 = vpop.f32.mrf.mxu3  ;;  %v545_v20 = vpop.f32.mrf.mxu1  ;;  %v527_v48 = vadd.f32 %v526_v17, %v508_v37 }
  0xde   :  { %v581_v14 = vadd.f32 %v580_v10, %v561_v9 }
  0xdf   :  { %v546_v46 = vadd.f32 %v545_v20, %v527_v48 }
  0xe4   :  { %v528_v25 = vpop.f32.mrf.mxu0  ;;  %v564_v49 = vpop.f32.mrf.mxu2 }
  0xe5   :  { %v547_v26 = vpop.f32.mrf.mxu1  ;;  %v583_v56 = vpop.f32.mrf.mxu3  ;;  %v529_v22 = vadd.f32 %v528_v25, %v510_v38 }
  0xe6   :  { %v584_v57 = vadd.f32 %v583_v56, %v564_v49 }
  0xe7   :  { %v548_v39 = vadd.f32 %v547_v26, %v529_v22 }
  0xec   :  { %v597_v18 = vpop.f32.mrf.mxu0  ;;  %v566_v16 = vpop.f32.mrf.mxu2 }
  0xed   :  { %v602_v2 = vpop.f32.mrf.mxu1  ;;  %v598_v50 = vadd.f32 %v597_v18, %v579_v12  ;;  %v585_v8 = vpop.f32.mrf.mxu3 }
  0xee   :  { %v603_v36 = vadd.f32 %v602_v2, %v584_v57  ;;  %v586_v28 = vadd.f32 %v585_v8, %v566_v16 }
  0xef   :  { %v607_v1 = vadd.f32 %v598_v50, %v541_v23 }
  0xf0   :  { %v609_v15 = vadd.f32 %v603_v36, %v546_v46 }
  0xf1   :  { %v611_v45 = vmax.f32 %v607_v1, 0.0 }
  0xf2   :  { %v613_v35 = vmax.f32 %v609_v15, 0.0 }
  0xf3   :  { %825 = vrsqrt.f32 %v611_v45  ;;  %vm622_vm0 = vcmp.eq.f32.partialorder %v611_v45, inf  ;;  %vm624_vm1 = vcmp.eq.f32.partialorder %v611_v45, 0.0  ;;  %v625_v33 = vand.u32 2147483648, %v611_v45 }
  0xf4   :  { %827 = vrsqrt.f32 %v613_v35  ;;  %v599_v43 = vpop.f32.mrf.mxu0  ;;  %vm646_vm2 = vcmp.eq.f32.partialorder %v613_v35, inf  ;;  %v649_v26 = vand.u32 2147483648, %v613_v35  ;;  %vm648_vm3 = vcmp.eq.f32.partialorder %v613_v35, 0.0 }
  0xf5   :  { %v604_v29 = vpop.f32.mrf.mxu1  ;;  %v600_v40 = vadd.f32 %v599_v43, %v581_v14 }
  0xf6   :  { %v605_v41 = vadd.f32 %v604_v29, %v586_v28 }
  0xf7   :  { %v608_v21 = vadd.f32 %v600_v40, %v543_v63 }
  0xf8   :  { %v610_v0 = vadd.f32 %v605_v41, %v548_v39 }
  0xf9   :  { %v826_v30 = vpop.eup %825  ;;  %v612_v31 = vmax.f32 %v608_v21, 0.0 }
  0xfa   :  { %v614_v24 = vmax.f32 %v610_v0, 0.0  ;;  %v828_v53 = vpop.eup %827  ;;  %v616_v51 = vmul.f32 %v826_v30, %v611_v45 }
  0xfb   :  { %v640_v54 = vmul.f32 %v828_v53, %v613_v35  ;;  %829 = vrsqrt.f32 %v612_v31  ;;  %vm634_vm4 = vcmp.eq.f32.partialorder %v612_v31, inf  ;;  %v637_v58 = vand.u32 2147483648, %v612_v31 }
  0xfc   :  { %v617_v52 = vmul.f32 %v826_v30, %v616_v51  ;;  %831 = vrsqrt.f32 %v614_v24  ;;  %vm636_vm5 = vcmp.eq.f32.partialorder %v612_v31, 0.0  ;;  %vm658_vm6 = vcmp.eq.f32.partialorder %v614_v24, inf }
  0xfd   :  { %v641_v3 = vmul.f32 %v828_v53, %v640_v54  ;;  %v661_v18 = vand.u32 2147483648, %v614_v24  ;;  %vm660_vm7 = vcmp.eq.f32.partialorder %v614_v24, 0.0 }
  0xfe   :  { %v618_v4 = vmul.f32 0.5, %v617_v52 }
  0xff   :  { %v642_v59 = vmul.f32 0.5, %v641_v3 }
 0x100   :  { %v619_v55 = vsub.f32 1.5, %v618_v4 }
 0x101   :  { %v830_v60 = vpop.eup %829  ;;  %v643_v61 = vsub.f32 1.5, %v642_v59 }
 0x102   :  { %v832_v62 = vpop.eup %831  ;;  %v628_v6 = vmul.f32 %v830_v60, %v612_v31  ;;  %v620_v7 = vmul.f32 %v826_v30, %v619_v55 }
 0x103   :  { %v652_v9 = vmul.f32 %v832_v62, %v614_v24  ;;  %v644_v10 = vmul.f32 %v828_v53, %v643_v61 }
 0x104   :  { %v629_v17 = vmul.f32 %v830_v60, %v628_v6  ;;  %v621_v20 = vmul.f32 %v620_v7, %v611_v45 }
 0x105   :  { %v653_v32 = vmul.f32 %v832_v62, %v652_v9  ;;  %v645_v13 = vmul.f32 %v644_v10, %v613_v35 }
 0x106   :  { %v630_v19 = vmul.f32 0.5, %v629_v17  ;;  %v623_v25 = vsel %vm622_vm0, %v611_v45, %v621_v20 }
 0x107   :  { %v654_v49 = vmul.f32 0.5, %v653_v32  ;;  %v626_v56 = vsel %vm624_vm1, %v625_v33, %v623_v25  ;;  %v647_v27 = vsel %vm646_vm2, %v613_v35, %v645_v13 }
 0x108   :  { %v631_v37 = vsub.f32 1.5, %v630_v19  ;;  %v650_v34 = vsel %vm648_vm3, %v649_v26, %v647_v27  ;;  %663 = vst [vmem:[#allocation8] sm:$0xff] %v626_v56 }
 0x109   :  { %v655_v44 = vsub.f32 1.5, %v654_v49  ;;  %665 = vst [vmem:[#allocation8 + $0x10] sm:$0xff] %v650_v34 }
 0x10a   :  { %v632_v47 = vmul.f32 %v830_v60, %v631_v37 }
 0x10b   :  { %v656_v48 = vmul.f32 %v832_v62, %v655_v44 }
 0x10c   :  { %v633_v57 = vmul.f32 %v632_v47, %v612_v31 }
 0x10d   :  { %v657_v11 = vmul.f32 %v656_v48, %v614_v24 }
 0x10e   :  { %v635_v12 = vsel %vm634_vm4, %v612_v31, %v633_v57 }
 0x10f   :  { %v638_v2 = vsel %vm636_vm5, %v637_v58, %v635_v12  ;;  %v659_v23 = vsel %vm658_vm6, %v614_v24, %v657_v11 }
 0x110   :  { %v662_v46 = vsel %vm660_vm7, %v661_v18, %v659_v23  ;;  %664 = vst [vmem:[#allocation8 + $0x8] sm:$0xff] %v638_v2 }
 0x111   :  { %666 = vst [vmem:[#allocation8 + $0x18] sm:$0xff] %v662_v46 }
 0x112   :  { %679 = dma.vmem_to_hbm [thread:$0]  %s672_s2, 512, %s674_s5, [#allocation4], %s943_s6, %s943_s6, %s944_s7  }
 0x113   :  { %933 = dma.done.wait [#allocation4], 512  }
 0x114   :  { %934 = vsyncadd [#allocation4], 4294966784 }
 0x115   :  { %684 = vsyncpa [#allocation3], 1 }
 0x116   :  { %685 = vsyncpa [#allocation6], 1 }
 0x117   :  { %686 = vsyncpa [#allocation4], 1 }

</bundles_post_ra>
